<compile_context>
chip_gen: v7x
topology: tpu7x:2x2x1
jax: 0.10.0
libtpu: 0.0.40
codegen_flags: <defaults>
</compile_context>

<pallas_src>
import functools
import math

import jax
import jax.numpy as jnp
from jax import lax
from jax.experimental import pallas as pl
from jax.experimental.pallas import tpu as pltpu

_INV_SQRT2 = 0.7071067811865476
_VMEM_LIMIT = 32 * 1024 * 1024  # raise v5e's 16 MiB scoped default; fine on v6e/v7x


def _pick_tile(dim, target, gran):
    """Largest tile <= target that divides `dim` and is a multiple of `gran`,
    or the full dim when the dim is small / has no suitable divisor."""
    if dim <= target:
        return dim
    t = (min(target, dim) // gran) * gran
    while t >= gran:
        if dim % t == 0:
            return t
        t -= gran
    return dim


# ------------------------- dense (tiled matmul, optional fused residual+LN) ----

def _dense_kernel(x_ref, w_ref, b_ref, *rest, activation, fuse_ln, ln_eps):
    if fuse_ln:
        r_ref, g_ref, bb_ref, o_ref, acc_ref = rest
    else:
        o_ref, acc_ref = rest

    @pl.when(pl.program_id(2) == 0)
    def _():
        acc_ref[...] = jnp.zeros_like(acc_ref)

    # bf16 x bf16 -> f32 accumulate on the MXU (inputs already bf16; no casts).
    acc_ref[...] += jnp.dot(x_ref[...], w_ref[...],
                            preferred_element_type=jnp.float32)

    @pl.when(pl.program_id(2) == pl.num_programs(2) - 1)
    def _():
        y = acc_ref[...] + b_ref[...]
        if activation == "gelu":            # exact (erf) GELU, as in HF BERT
            y = 0.5 * y * (1.0 + lax.erf(y * _INV_SQRT2))
        elif activation == "tanh":          # BERT pooler activation
            y = jnp.tanh(y)
        if fuse_ln:                         # residual add + LayerNorm, f32 math
            y = y + r_ref[...].astype(jnp.float32)
            mean = jnp.mean(y, axis=-1, keepdims=True)
            yc = y - mean
            var = jnp.mean(yc * yc, axis=-1, keepdims=True)
            y = yc * lax.rsqrt(var + ln_eps)
            y = y * g_ref[...] + bb_ref[...]
        o_ref[...] = y.astype(o_ref.dtype)


def dense(x, w, b, activation="none", *, ln=None, residual=None,
          out_dtype=jnp.bfloat16, tm=512, tn=512, tk=4096):
    """y = act(x @ w + b); optionally fuses LayerNorm(y + residual) when ln is
    given (requires the full N dim in one tile).  x:[M,K] bf16, w:[K,N] bf16,
    b:[N] f32; output `out_dtype` (bf16 by default)."""
    M, K = x.shape
    _, N = w.shape
    fuse_ln = ln is not None
    if fuse_ln:
        tn = N                              # LN reduces over the full row
    tm = _pick_tile(M, tm, 8)
    tn = _pick_tile(N, tn, 128)
    tk = _pick_tile(K, tk, 128)             # full K for BERT-size GEMMs
    grid = (M // tm, N // tn, K // tk)

    in_specs = [
        pl.BlockSpec((tm, tk), lambda i, j, k: (i, k)),
        pl.BlockSpec((tk, tn), lambda i, j, k: (k, j)),
        pl.BlockSpec((1, tn), lambda i, j, k: (0, j)),
    ]
    args = [x, w, b.reshape(1, N)]
    if fuse_ln:
        g, beta, eps = ln
        in_specs += [
            pl.BlockSpec((tm, N), lambda i, j, k: (i, 0)),   # residual rows
            pl.BlockSpec((1, N), lambda i, j, k: (0, 0)),    # gamma
            pl.BlockSpec((1, N), lambda i, j, k: (0, 0)),    # beta
        ]
        args += [residual, g.reshape(1, N), beta.reshape(1, N)]
    else:
        eps = 0.0

    kernel = functools.partial(_dense_kernel, activation=activation,
                               fuse_ln=fuse_ln, ln_eps=eps)
    return pl.pallas_call(
        kernel,
        out_shape=jax.ShapeDtypeStruct((M, N), out_dtype),
        grid=grid,
        in_specs=in_specs,
        out_specs=pl.BlockSpec((tm, tn), lambda i, j, k: (i, j)),
        scratch_shapes=[pltpu.VMEM((tm, tn), jnp.float32)],
        compiler_params=pltpu.CompilerParams(
            dimension_semantics=("parallel", "parallel", "arbitrary"),
            vmem_limit_bytes=_VMEM_LIMIT),
    )(*args)


# ------------------------- LayerNorm (embeddings only) -------------------------

def _ln_kernel(x_ref, g_ref, b_ref, o_ref, *, eps):
    x = x_ref[...].astype(jnp.float32)
    mean = jnp.mean(x, axis=-1, keepdims=True)
    xc = x - mean
    var = jnp.mean(xc * xc, axis=-1, keepdims=True)
    y = xc * lax.rsqrt(var + eps)
    o_ref[...] = (y * g_ref[...] + b_ref[...]).astype(o_ref.dtype)


def layernorm(x, g, b, eps=1e-12, *, tm=512):
    """LayerNorm over last dim of [M, H]; bf16 I/O, f32 statistics."""
    M, H = x.shape
    tm = _pick_tile(M, tm, 8)
    row_spec = pl.BlockSpec((tm, H), lambda i: (i, 0))
    vec_spec = pl.BlockSpec((1, H), lambda i: (0, 0))
    return pl.pallas_call(
        functools.partial(_ln_kernel, eps=eps),
        out_shape=jax.ShapeDtypeStruct((M, H), jnp.bfloat16),
        grid=(M // tm,),
        in_specs=[row_spec, vec_spec, vec_spec],
        out_specs=row_spec,
        compiler_params=pltpu.CompilerParams(
            dimension_semantics=("parallel",),
            vmem_limit_bytes=_VMEM_LIMIT),
    )(x, g.reshape(1, H), b.reshape(1, H))


# ------------------------- multi-head attention -------------------------

def _attention_kernel(qkv_ref, m_ref, o_ref, *, nH, dH, scale):
    """qkv_ref: (S, 3H) bf16 with columns [Q | K | V], each laid out head-major
    (head h -> cols h*dH:(h+1)*dH).  m_ref: (1, S) additive key mask.
    o_ref: (S, H) bf16 token-major context (same layout the wo GEMM reads)."""
    H = nH * dH
    mask = m_ref[...]                                    # (1, S) f32
    ctxs = []
    for h in range(nH):                                  # one (S,S) score live at a time
        q = qkv_ref[:, h * dH:(h + 1) * dH] * scale      # bf16
        k = qkv_ref[:, H + h * dH:H + (h + 1) * dH]
        v = qkv_ref[:, 2 * H + h * dH:2 * H + (h + 1) * dH]
        s = lax.dot_general(q, k, (((1,), (1,)), ((), ())),
                            preferred_element_type=jnp.float32)   # (S, S) = q @ k^T
        s = s + mask
        s = s - jnp.max(s, axis=-1, keepdims=True)
        p = jnp.exp(s)
        p = p * pl.reciprocal(jnp.sum(p, axis=-1, keepdims=True), approx=True)
        ctxs.append(jnp.dot(p.astype(jnp.bfloat16), v,
                            preferred_element_type=jnp.float32))  # (S, dH)
    # Single lane-dense full-width store of all heads.
    o_ref[...] = jnp.concatenate(ctxs, axis=-1).astype(o_ref.dtype)


def attention(qkv, add_mask, *, B, S, nH, dH):
    """qkv: [B*S, 3H] bf16 (fused QKV projection); add_mask: [B, 1, S] additive.
    Returns token-major context [B*S, H] bf16 (directly consumable by wo)."""
    H = nH * dH
    kernel = functools.partial(_attention_kernel, nH=nH, dH=dH,
                               scale=1.0 / math.sqrt(dH))
    return pl.pallas_call(
        kernel,
        out_shape=jax.ShapeDtypeStruct((B * S, H), jnp.bfloat16),
        grid=(B,),
        in_specs=[pl.BlockSpec((S, 3 * H), lambda b: (b, 0)),
                  pl.BlockSpec((None, 1, S), lambda b: (b, 0, 0))],
        out_specs=pl.BlockSpec((S, H), lambda b: (b, 0)),
        compiler_params=pltpu.CompilerParams(
            dimension_semantics=("parallel",),
            vmem_limit_bytes=_VMEM_LIMIT),
    )(qkv, add_mask)


# ------------------------- Parameters -------------------------

def init_params(key, cfg):
    H, I = cfg["hidden"], cfg["inter"]

    def norm(k, shape):
        return (0.02 * jax.random.normal(k, shape, jnp.float32)).astype(jnp.bfloat16)

    keys = list(jax.random.split(key, 8 + 8 * cfg["layers"]))
    it = iter(keys)
    params = {
        "word_emb": norm(next(it), (cfg["vocab"], H)),
        "pos_emb": norm(next(it), (cfg["max_pos"], H)),
        "type_emb": norm(next(it), (cfg["type_vocab"], H)),
        "emb_ln_g": jnp.ones((H,), jnp.float32),
        "emb_ln_b": jnp.zeros((H,), jnp.float32),
        "w_pool": norm(next(it), (H, H)),
        "b_pool": jnp.zeros((H,), jnp.float32),
        "w_cls": norm(next(it), (H, cfg["num_labels"])),
        "b_cls": jnp.zeros((cfg["num_labels"],), jnp.float32),
        "layers": [],
    }
    for _ in range(cfg["layers"]):
        lp = {
            # Fused Q/K/V projection: columns [0:H)=Q, [H:2H)=K, [2H:3H)=V,
            # each head-major inside its H block.
            "w_qkv": norm(next(it), (H, 3 * H)),
            "b_qkv": jnp.zeros((3 * H,), jnp.float32),
            "wo": norm(next(it), (H, H)), "bo": jnp.zeros((H,), jnp.float32),
            "ln1_g": jnp.ones((H,), jnp.float32),
            "ln1_b": jnp.zeros((H,), jnp.float32),
            "wi": norm(next(it), (H, I)), "bi": jnp.zeros((I,), jnp.float32),
            "wf": norm(next(it), (I, H)), "bf": jnp.zeros((H,), jnp.float32),
            "ln2_g": jnp.ones((H,), jnp.float32),
            "ln2_b": jnp.zeros((H,), jnp.float32),
        }
        params["layers"].append(lp)
    return params


# ------------------------- Forward pass -------------------------

def basic_bert_forward(params, cfg, input_ids, attention_mask=None,
                       token_type_ids=None):
    B, S = input_ids.shape
    H, nH = cfg["hidden"], cfg["heads"]
    dH = H // nH
    if attention_mask is None:
        attention_mask = jnp.ones((B, S), jnp.int32)
    if token_type_ids is None:
        token_type_ids = jnp.zeros((B, S), jnp.int32)

    # Embeddings (gathers are plain-JAX glue) + LayerNorm (Pallas, bf16 I/O).
    emb = (jnp.take(params["word_emb"], input_ids, axis=0)
           + params["pos_emb"][:S][None, :, :]
           + jnp.take(params["type_emb"], token_type_ids, axis=0))
    h = layernorm(emb.reshape(B * S, H),
                  params["emb_ln_g"], params["emb_ln_b"])        # bf16 [B*S, H]

    # Extended additive attention mask, HF-BERT style: (1 - mask) * -10000
    add_mask = ((1.0 - attention_mask.astype(jnp.float32)) * -10000.0)[:, None, :]

    for lp in params["layers"]:
        x2 = h                                                   # bf16 [B*S, H]
        qkv = dense(x2, lp["w_qkv"], lp["b_qkv"])                # bf16 [B*S, 3H]
        ctx = attention(qkv, add_mask, B=B, S=S, nH=nH, dH=dH)   # bf16 [B*S, H]
        # wo GEMM with residual-add + LayerNorm fused into the epilogue.
        h1 = dense(ctx, lp["wo"], lp["bo"],
                   ln=(lp["ln1_g"], lp["ln1_b"], 1e-12), residual=x2)
        inter = dense(h1, lp["wi"], lp["bi"], activation="gelu") # bf16 [B*S, I]
        # wf GEMM with residual-add + LayerNorm fused into the epilogue.
        h = dense(inter, lp["wf"], lp["bf"],
                  ln=(lp["ln2_g"], lp["ln2_b"], 1e-12), residual=h1)

    h = h.reshape(B, S, H)
    # Pooler: tanh(dense(h[:, 0])) -> BERT outputs[1]; then classifier head.
    cls = h[:, 0, :]                                             # bf16 [B, H]
    pooled = dense(cls, params["w_pool"], params["b_pool"], activation="tanh")
    logits = dense(pooled, params["w_cls"], params["b_cls"],
                   out_dtype=jnp.float32)                        # f32 [B, num_labels]
    return logits


# ------------------------- Main -------------------------

if __name__ == "__main__":
    cfg = dict(vocab=100, hidden=32, heads=2, layers=2, inter=64,
               max_pos=32, type_vocab=2, num_labels=3)
    B, S = 2, 8

    root = jax.random.PRNGKey(0)
    k_params, k_ids = jax.random.split(root)
    params = init_params(k_params, cfg)

    input_ids = jax.random.randint(k_ids, (B, S), 0, cfg["vocab"], dtype=jnp.int32)
    attention_mask = jnp.ones((B, S), jnp.int32).at[1, 6:].set(0)  # pad last 2 tokens of ex 1
    token_type_ids = jnp.zeros((B, S), jnp.int32)

    logits = basic_bert_forward(params, cfg, input_ids, attention_mask, token_type_ids)
    logits = jax.block_until_ready(logits)
    assert logits.shape == (B, cfg["num_labels"])
    assert bool(jnp.all(jnp.isfinite(logits)))
    print("KERNEL_OK")
</pallas_src>

<mosaic_0001>
module attributes {stable_mosaic.version = 11 : i64} {
  func.func @_ln_kernel(%arg0: i32, %arg1: memref<16x32xbf16, #tpu.memory_space<vmem>>, %arg2: memref<1x32xf32, #tpu.memory_space<vmem>>, %arg3: memref<1x32xf32, #tpu.memory_space<vmem>>, %arg4: memref<16x32xbf16, #tpu.memory_space<vmem>>) attributes {dimension_semantics = [#tpu.dimension_semantics<parallel>], iteration_bounds = array<i64: 1>, scalar_prefetch = 0 : i64, scratch_operands = 0 : i64, tpu.core_type = #tpu.core_type<tc>, window_params = [{transform_indices = @transform_0, window_bounds = array<i64: 16, 32>}, {pipeline_mode = #tpu.pipeline_mode<synchronous>, transform_indices = @transform_1, window_bounds = array<i64: 1, 32>}, {pipeline_mode = #tpu.pipeline_mode<synchronous>, transform_indices = @transform_2, window_bounds = array<i64: 1, 32>}, {transform_indices = @transform_3, window_bounds = array<i64: 16, 32>}]} {
    %c0 = arith.constant 0 : index
    %c0_0 = arith.constant 0 : index
    %0 = vector.load %arg1[%c0, %c0_0] : memref<16x32xbf16, #tpu.memory_space<vmem>>, vector<16x32xbf16>
    %1 = arith.extf %0 : vector<16x32xbf16> to vector<16x32xf32>
    %cst = arith.constant dense<0.000000e+00> : vector<16xf32>
    %2 = vector.multi_reduction <add>, %1, %cst [1] : vector<16x32xf32> to vector<16xf32>
    %3 = vector.shape_cast %2 : vector<16xf32> to vector<16x1xf32>
    %cst_1 = arith.constant 3.200000e+01 : f32
    %4 = vector.broadcast %cst_1 : f32 to vector<16x1xf32>
    %5 = arith.divf %3, %4 : vector<16x1xf32>
    %6 = vector.broadcast %5 : vector<16x1xf32> to vector<16x32xf32>
    %7 = arith.subf %1, %6 : vector<16x32xf32>
    %8 = arith.mulf %7, %7 : vector<16x32xf32>
    %cst_2 = arith.constant dense<0.000000e+00> : vector<16xf32>
    %9 = vector.multi_reduction <add>, %8, %cst_2 [1] : vector<16x32xf32> to vector<16xf32>
    %10 = vector.shape_cast %9 : vector<16xf32> to vector<16x1xf32>
    %cst_3 = arith.constant 3.200000e+01 : f32
    %11 = vector.broadcast %cst_3 : f32 to vector<16x1xf32>
    %12 = arith.divf %10, %11 : vector<16x1xf32>
    %cst_4 = arith.constant 9.99999996E-13 : f32
    %13 = vector.broadcast %cst_4 : f32 to vector<16x1xf32>
    %14 = arith.addf %12, %13 : vector<16x1xf32>
    %15 = math.rsqrt %14 : vector<16x1xf32>
    %16 = vector.broadcast %15 : vector<16x1xf32> to vector<16x32xf32>
    %17 = arith.mulf %7, %16 : vector<16x32xf32>
    %c0_5 = arith.constant 0 : index
    %c0_6 = arith.constant 0 : index
    %18 = vector.load %arg2[%c0_5, %c0_6] : memref<1x32xf32, #tpu.memory_space<vmem>>, vector<1x32xf32>
    %19 = vector.broadcast %18 : vector<1x32xf32> to vector<16x32xf32>
    %20 = arith.mulf %17, %19 : vector<16x32xf32>
    %c0_7 = arith.constant 0 : index
    %c0_8 = arith.constant 0 : index
    %21 = vector.load %arg3[%c0_7, %c0_8] : memref<1x32xf32, #tpu.memory_space<vmem>>, vector<1x32xf32>
    %22 = vector.broadcast %21 : vector<1x32xf32> to vector<16x32xf32>
    %23 = arith.addf %20, %22 : vector<16x32xf32>
    %24 = arith.truncf %23 : vector<16x32xf32> to vector<16x32xbf16>
    %c0_9 = arith.constant 0 : index
    %c0_10 = arith.constant 0 : index
    %25 = vector.load %arg4[%c0_9, %c0_10] : memref<16x32xbf16, #tpu.memory_space<vmem>>, vector<16x32xbf16>
    tpu.vector_store %arg4[%c0_9, %c0_10], %24 {strides = array<i32>} : memref<16x32xbf16, #tpu.memory_space<vmem>>, vector<16x32xbf16>,
    return
  }
  func.func @transform_0(%arg0: i32) -> (i32, i32) {
    %c0_i32 = arith.constant 0 : i32
    %c0_i32_0 = arith.constant 0 : i32
    return %arg0, %c0_i32 : i32, i32
  }
  func.func @transform_1(%arg0: i32) -> (i32, i32) {
    %c0_i32 = arith.constant 0 : i32
    %c0_i32_0 = arith.constant 0 : i32
    %c0_i32_1 = arith.constant 0 : i32
    return %c0_i32, %c0_i32_0 : i32, i32
  }
  func.func @transform_2(%arg0: i32) -> (i32, i32) {
    %c0_i32 = arith.constant 0 : i32
    %c0_i32_0 = arith.constant 0 : i32
    %c0_i32_1 = arith.constant 0 : i32
    return %c0_i32, %c0_i32_0 : i32, i32
  }
  func.func @transform_3(%arg0: i32) -> (i32, i32) {
    %c0_i32 = arith.constant 0 : i32
    %c0_i32_0 = arith.constant 0 : i32
    return %arg0, %c0_i32 : i32, i32
  }
}

</mosaic_0001>

<bundles_post_ra>
// kernel: tpu_custom_call.1
= control target key start
LH: loop header
LB: loop body
LE: loop exit
PB: predicated region body
PF: predicated region fallthrough
CT: control target
= control target key end

     0   :  { %8 = vsyncpa [#allocation3], 0  ;;  %s237_s0 = inlined_call_operand.hbm [shape: bf16[16,32], index: 0, kind: input, shape index: {}]   ;;  %s238_s1 = inlined_call_operand.vmem [shape: f32[1,32], index: 1, kind: input, shape index: {}]   ;;  %s239_s2 = inlined_call_operand.vmem [shape: f32[1,32], index: 2, kind: input, shape index: {}]   ;;  %s240_s3 = inlined_call_operand.hbm [shape: bf16[16,32], index: 3, kind: output, shape index: {}]  }
   0x1   :  { %9 = vsyncpa [#allocation4], 0  ;;  %s173_s12 = smov [#allocation2]   ;;  %s125_s16 = scalar_lea.hbm %s237_s0, 128 }
   0x2   :  { %s15_s13 = sshll.u32 %s173_s12, 4  ;;  %p126_p0 = scmp.ne.s32.totalorder %s237_s0, %s125_s16  ;;  %s16_s13 = int_to_ptr.vmem [resolvable:$true] %s15_s13 }
   0x3   :  { %p129_p1 = scmp.lt.u32.totalorder %s125_s16, %s237_s0 }
   0x5   :  { %p131_p2 = pnand %p129_p1, %p126_p0 }
   0x7   :  { %134 = shalt.err (!%p131_p2)
}
   0x8   :  { %s135_s21 = scalar_lea.vmem %s16_s13, 128  ;;  %p140_p4 = scmp.lt.s32.totalorder %s16_s13, %s16_s13 }
   0x9   :  { %p136_p3 = scmp.ne.s32.totalorder %s16_s13, %s135_s21  ;;  %p141_p5 = scmp.lt.s32.totalorder %s135_s21, %s135_s21 }
   0xb   :  { %p142_p6 = por %p141_p5, %p140_p4 }
   0xd   :  { %p143_p7 = pnand %p142_p6, %p136_p3 }
   0xf   :  { %146 = shalt.err (!%p143_p7)
}
  0x10   :  { %s174_s22 = smov 64   ;;  %s175_s23 = smov 4  }
  0x11   :  { %21 = dma.hbm_to_vmem [thread:$0]  %s237_s0, 128, %s16_s13, [#allocation3], %s174_s22, %s174_s22, %s175_s23  }
  0x12   :  { %169 = dma.done.wait [#allocation3], 128  }
  0x13   :  { %170 = vsyncadd [#allocation3], 4294967168  ;;  %v114_v0 = vld [vmem:[#allocation2] sm:$0xff]   ;;  %vm33_vm0 = vcmask 261120   ;;  %vm87_vm1 = vcmask 257024   ;;  %s176_s29 = smov [#allocation5]  }
  0x14   :  { %v115_v1 = vunpack.c.l.bf16 %v114_v0  ;;  %v116_v2 = vunpack.c.h.bf16 %v114_v0  ;;  %v107_v22 = vld [vmem:[%s238_s1] ss:$0 sm:$0xff]  ;;  %s95_s30 = sshll.u32 %s176_s29, 4  ;;  %s96_s30 = int_to_ptr.vmem [resolvable:$true] %s95_s30 }
  0x15   :  { %v108_v24 = vld [vmem:[%s239_s2] ss:$0 sm:$0xff]  ;;  %s147_s1 = scalar_lea.vmem %s96_s30, 128  ;;  %p152_p9 = scmp.lt.s32.totalorder %s96_s30, %s96_s30 }
  0x16   :  { %v34_v3 = vsel %vm33_vm0, %v115_v1, 0.0  ;;  %v37_v4 = vsel %vm33_vm0, %v116_v2, 0.0  ;;  %p148_p8 = scmp.ne.s32.totalorder %s96_s30, %s147_s1  ;;  %p153_p10 = scmp.lt.s32.totalorder %s147_s1, %s147_s1 }
  0x17   :  { %35 = vadd.xlane.f32.xlu0 %v34_v3 }
  0x18   :  { %p154_p11 = por %p153_p10, %p152_p9 }
  0x1a   :  { %p155_p12 = pnand %p154_p11, %p148_p8 }
  0x1b   :  { %38 = vadd.xlane.f32.xlu0 %v37_v4 }
  0xa4   :  { %v36_v5 = vpop.xlane.xlu0 %35 }
  0xa5   :  { %v41_v6 = vmul.f32 0.03125, %v36_v5 }
  0xa7   :  { %v43_v7 = vsub.f32 %v115_v1, %v41_v6 }
  0xa8   :  { %v39_v8 = vpop.xlane.xlu0 %38 }
  0xa9   :  { %v42_v9 = vmul.f32 0.03125, %v39_v8  ;;  %v45_v10 = vmul.f32 %v43_v7, %v43_v7 }
  0xab   :  { %v44_v11 = vsub.f32 %v116_v2, %v42_v9  ;;  %v47_v12 = vsel %vm33_vm0, %v45_v10, 0.0 }
  0xac   :  { %48 = vadd.xlane.f32.xlu1 %v47_v12 }
  0xad   :  { %v46_v13 = vmul.f32 %v44_v11, %v44_v11 }
  0xaf   :  { %v50_v14 = vsel %vm33_vm0, %v46_v13, 0.0 }
  0xb0   :  { %51 = vadd.xlane.f32.xlu1 %v50_v14 }
 0x139   :  { %v49_v15 = vpop.xlane.xlu1 %48 }
 0x13a   :  { %v53_v16 = vmul.f32 0.03125, %v49_v15 }
 0x13c   :  { %v55_v17 = vadd.f32 1e-12, %v53_v16 }
 0x13d   :  { %v52_v18 = vpop.xlane.xlu1 %51 }
 0x13e   :  { %121 = vrsqrt.f32 %v55_v17  ;;  %v54_v19 = vmul.f32 0.03125, %v52_v18 }
 0x140   :  { %v56_v20 = vadd.f32 1e-12, %v54_v19 }
 0x142   :  { %123 = vrsqrt.f32 %v56_v20 }
 0x148   :  { %v122_v21 = vpop.eup %121 }
 0x149   :  { %v59_v23 = vmul.f32 %v122_v21, %v43_v7 }
 0x14b   :  { %v68_v25 = vmul.f32 %v107_v22, %v59_v23 }
 0x14c   :  { %v124_v26 = vpop.eup %123 }
 0x14d   :  { %v60_v27 = vmul.f32 %v124_v26, %v44_v11  ;;  %v77_v28 = vadd.f32 %v108_v24, %v68_v25 }
 0x14f   :  { %v69_v29 = vmul.f32 %v107_v22, %v60_v27  ;;  %v111_v30 = vpack.c.bf16 %v77_v28, %v77_v28 }
 0x151   :  { %v78_v31 = vadd.f32 %v108_v24, %v69_v29  ;;  %88 = vst.msk [vmem:[#allocation5] sm:$0xf] %vm87_vm1, %v111_v30 }
 0x153   :  { %v112_v32 = vpack.c.bf16 %v78_v31, %v78_v31 }
 0x155   :  { %89 = vst.msk [vmem:[#allocation5 + $0x4] sm:$0xf] %vm87_vm1, %v112_v32 }
 0x156   :  { %158 = shalt.err (!%p155_p12)
}
 0x157   :  { %s159_s5 = scalar_lea.hbm %s240_s3, 128 }
 0x158   :  { %p160_p13 = scmp.ne.s32.totalorder %s240_s3, %s159_s5  ;;  %p163_p0 = scmp.lt.u32.totalorder %s159_s5, %s240_s3 }
 0x15a   :  { %p165_p1 = pnand %p163_p0, %p160_p13 }
 0x15c   :  { %168 = shalt.err (!%p165_p1)
}
 0x15d   :  { %101 = dma.vmem_to_hbm [thread:$0]  %s96_s30, 128, %s240_s3, [#allocation4], %s174_s22, %s174_s22, %s175_s23  }
 0x15e   :  { %171 = dma.done.wait [#allocation4], 128  }
 0x15f   :  { %172 = vsyncadd [#allocation4], 4294967168 }
 0x160   :  { %105 = vsyncpa [#allocation3], 1 }
 0x161   :  { %106 = vsyncpa [#allocation4], 1 }

</bundles_post_ra>
